<compile_context>
chip_gen: v7x
topology: tpu7x:2x2x1
jax: 0.10.0
libtpu: 0.0.40
codegen_flags: <defaults>
</compile_context>

<pallas_src>
import jax
import jax.numpy as jnp
from jax.experimental import pallas as pl
from jax.experimental.pallas import tpu as pltpu


def _round_up(x, m):
    return ((x + m - 1) // m) * m


def mlp_kernel(x_ref, w1_ref, w2_ref, w3_ref, w4_ref, b_ref, out_ref):
    """One batch tile: out = relu(relu(relu(x@W1+b1)@W2+b2)@W3+b3)@W4+b4.

    Weights are bf16 (VMEM-resident across grid steps). x arrives in its native
    dtype/width and is cast to bf16 only at the first dot. Accumulation, bias add
    and ReLU stay in f32 (v5e-safe). Output is stored unpadded in out_ref.dtype.
    """
    cd = w1_ref.dtype                       # bf16 MXU operand dtype
    h1 = w1_ref.shape[1]
    h2 = w2_ref.shape[1]
    h3 = w3_ref.shape[1]
    no = w4_ref.shape[1]

    b = b_ref[...]                          # (4, bw) f32, packed biases

    x = x_ref[...].astype(cd)               # in-kernel cast; no wrapper HBM pass
    h = jnp.dot(x, w1_ref[...], preferred_element_type=jnp.float32) + b[0:1, :h1]
    h = jnp.maximum(h, 0.0)

    h = jnp.dot(h.astype(cd), w2_ref[...],
                preferred_element_type=jnp.float32) + b[1:2, :h2]
    h = jnp.maximum(h, 0.0)

    h = jnp.dot(h.astype(cd), w3_ref[...],
                preferred_element_type=jnp.float32) + b[2:3, :h3]
    h = jnp.maximum(h, 0.0)

    out = jnp.dot(h.astype(cd), w4_ref[...],
                  preferred_element_type=jnp.float32) + b[3:4, :no]
    out_ref[...] = out.astype(out_ref.dtype)


def prepare_params(params, compute_dtype=jnp.bfloat16):
    """Pad/cast the static parameters ONCE; reuse the result across forward calls.

    Weights are stored [in, out]:
      w1: rows stay at native n_input (x is streamed unpadded), cols -> mult of 128
      w2, w3: both dims -> mult of 128 (exact zero padding)
      w4: rows -> mult of 128, cols stay at native n_out (unpadded output)
    Biases are packed into a single (4, bw) f32 array -> one resident DMA.
    """
    n_in = params["w1"].shape[0]
    h1 = params["w1"].shape[1]
    h2 = params["w2"].shape[1]
    h3 = params["w3"].shape[1]
    n_out = params["w4"].shape[1]

    h1_p, h2_p, h3_p = (_round_up(d, 128) for d in (h1, h2, h3))

    def pad_w(w, rp, cp):
        r, c = w.shape
        return jnp.pad(w, ((0, rp - r), (0, cp - c))).astype(compute_dtype)

    w1 = pad_w(params["w1"], n_in, h1_p)
    w2 = pad_w(params["w2"], h1_p, h2_p)
    w3 = pad_w(params["w3"], h2_p, h3_p)
    w4 = pad_w(params["w4"], h3_p, n_out)

    bw = _round_up(max(h1, h2, h3, n_out), 128)

    def pad_b(b):
        b = b.reshape(1, -1).astype(jnp.float32)
        return jnp.pad(b, ((0, 0), (0, bw - b.shape[1])))

    b_packed = jnp.concatenate(
        [pad_b(params["b1"]), pad_b(params["b2"]),
         pad_b(params["b3"]), pad_b(params["b4"])], axis=0)   # (4, bw)

    return (w1, w2, w3, w4, b_packed)


def mlp_forward(x, prepared, *, tm=None, out_dtype=jnp.bfloat16):
    """x: [B, n_input] (any float dtype). prepared: output of prepare_params."""
    w1, w2, w3, w4, b_packed = prepared
    B, n_in = x.shape
    assert n_in == w1.shape[0], "x feature dim must match w1 rows"
    n_out = w4.shape[1]

    # Batch tiling: one tile for small B; large lane-amortizing tiles for big B.
    # (sweep tm in {512, 1024, 2048} when tuning for a specific generation)
    if tm is None:
        tm = _round_up(B, 8) if B <= 1024 else 1024
    tm = max(8, _round_up(min(tm, _round_up(B, 8)), 8))
    grid = (pl.cdiv(B, tm),)   # ragged last tile: OOB rows read garbage, writes masked

    def tile_map(i):           # x / out move with the batch tile
        return (i, 0)

    def resident_map(i):       # weights / packed biases: same block every step
        return (0, 0)

    in_specs = [
        pl.BlockSpec((tm, n_in), tile_map),          # x: native width & dtype
        pl.BlockSpec(w1.shape, resident_map),
        pl.BlockSpec(w2.shape, resident_map),
        pl.BlockSpec(w3.shape, resident_map),
        pl.BlockSpec(w4.shape, resident_map),
        pl.BlockSpec(b_packed.shape, resident_map),
    ]
    out_spec = pl.BlockSpec((tm, n_out), tile_map)   # unpadded bf16 writeback

    return pl.pallas_call(
        mlp_kernel,
        out_shape=jax.ShapeDtypeStruct((B, n_out), out_dtype),
        grid=grid,
        in_specs=in_specs,
        out_specs=out_spec,
        compiler_params=pltpu.CompilerParams(
            dimension_semantics=("parallel",)),      # batch tiles across TCs (v7x)
    )(x, w1, w2, w3, w4, b_packed)


def init_params(key, n_input, n_hidden1, n_hidden2, n_hidden3, n_out):
    """nn.Linear-style uniform(-1/sqrt(fan_in), 1/sqrt(fan_in)) init.
    Weights stored as [in, out] (transposed vs PyTorch), biases as [1, out]."""
    dims = [(n_input, n_hidden1), (n_hidden1, n_hidden2),
            (n_hidden2, n_hidden3), (n_hidden3, n_out)]
    params = {}
    for i, (fan_in, fan_out) in enumerate(dims, start=1):
        key, kw, kb = jax.random.split(key, 3)
        bound = 1.0 / jnp.sqrt(jnp.float32(fan_in))
        params[f"w{i}"] = jax.random.uniform(
            kw, (fan_in, fan_out), jnp.float32, minval=-bound, maxval=bound)
        params[f"b{i}"] = jax.random.uniform(
            kb, (1, fan_out), jnp.float32, minval=-bound, maxval=bound)
    return params


def mlp_reference(x, p, compute_dtype=jnp.bfloat16):
    """Pure-JAX reference with the same bf16-operand / f32-accumulate recipe."""
    def dense(h, w, b):
        return jnp.dot(h.astype(compute_dtype), w.astype(compute_dtype),
                       preferred_element_type=jnp.float32) + b.astype(jnp.float32)
    h = jnp.maximum(dense(x, p["w1"], p["b1"]), 0.0)
    h = jnp.maximum(dense(h, p["w2"], p["b2"]), 0.0)
    h = jnp.maximum(dense(h, p["w3"], p["b3"]), 0.0)
    return dense(h, p["w4"], p["b4"])


if __name__ == "__main__":
    # Small shapes consistent with the module's forward.
    n_input, n_hidden1, n_hidden2, n_hidden3, n_out = 32, 64, 64, 32, 16

    key = jax.random.PRNGKey(0)
    key, kx1, kx2 = jax.random.split(key, 3)
    params = init_params(key, n_input, n_hidden1, n_hidden2, n_hidden3, n_out)
    prepared = prepare_params(params)     # padded/cast ONCE, reused across calls

    fwd = jax.jit(mlp_forward, static_argnames=("tm", "out_dtype"))

    # Case 1: small batch -> single tile, grid=(1,) (no per-step overhead).
    x1 = jax.random.normal(kx1, (16, n_input), jnp.float32)
    out1 = jax.block_until_ready(fwd(x1, prepared, tm=None))
    ref1 = mlp_reference(x1, params)
    assert out1.shape == (16, n_out)
    assert jnp.allclose(out1.astype(jnp.float32), ref1, atol=2e-2, rtol=2e-2), \
        "mismatch vs reference (case 1)"

    # Case 2: multi-tile parallel grid with a ragged last tile (200 = 3*64 + 8),
    # exercising the no-batch-padding path (masked writes for OOB rows).
    x2 = jax.random.normal(kx2, (200, n_input), jnp.float32)
    out2 = jax.block_until_ready(fwd(x2, prepared, tm=64))
    ref2 = mlp_reference(x2, params)
    assert out2.shape == (200, n_out)
    assert jnp.allclose(out2.astype(jnp.float32), ref2, atol=2e-2, rtol=2e-2), \
        "mismatch vs reference (case 2)"

    print("KERNEL_OK")
</pallas_src>

<mosaic_0001>
module attributes {stable_mosaic.version = 11 : i64} {
  func.func @mlp_kernel(%arg0: i32, %arg1: memref<16x32xf32, #tpu.memory_space<vmem>>, %arg2: memref<32x128xbf16, #tpu.memory_space<vmem>>, %arg3: memref<128x128xbf16, #tpu.memory_space<vmem>>, %arg4: memref<128x128xbf16, #tpu.memory_space<vmem>>, %arg5: memref<128x16xbf16, #tpu.memory_space<vmem>>, %arg6: memref<4x128xf32, #tpu.memory_space<vmem>>, %arg7: memref<16x16xbf16, #tpu.memory_space<vmem>>) attributes {dimension_semantics = [#tpu.dimension_semantics<parallel>], iteration_bounds = array<i64: 1>, scalar_prefetch = 0 : i64, scratch_operands = 0 : i64, tpu.core_type = #tpu.core_type<tc>, window_params = [{transform_indices = @transform_0, window_bounds = array<i64: 16, 32>}, {pipeline_mode = #tpu.pipeline_mode<synchronous>, transform_indices = @transform_1, window_bounds = array<i64: 32, 128>}, {pipeline_mode = #tpu.pipeline_mode<synchronous>, transform_indices = @transform_2, window_bounds = array<i64: 128, 128>}, {pipeline_mode = #tpu.pipeline_mode<synchronous>, transform_indices = @transform_3, window_bounds = array<i64: 128, 128>}, {pipeline_mode = #tpu.pipeline_mode<synchronous>, transform_indices = @transform_4, window_bounds = array<i64: 128, 16>}, {pipeline_mode = #tpu.pipeline_mode<synchronous>, transform_indices = @transform_5, window_bounds = array<i64: 4, 128>}, {transform_indices = @transform_6, window_bounds = array<i64: 16, 16>}]} {
    %c0 = arith.constant 0 : index
    %c0_0 = arith.constant 0 : index
    %0 = vector.load %arg6[%c0, %c0_0] : memref<4x128xf32, #tpu.memory_space<vmem>>, vector<4x128xf32>
    %c0_1 = arith.constant 0 : index
    %c0_2 = arith.constant 0 : index
    %1 = vector.load %arg1[%c0_1, %c0_2] : memref<16x32xf32, #tpu.memory_space<vmem>>, vector<16x32xf32>
    %2 = arith.truncf %1 : vector<16x32xf32> to vector<16x32xbf16>
    %c0_3 = arith.constant 0 : index
    %c0_4 = arith.constant 0 : index
    %3 = vector.load %arg2[%c0_3, %c0_4] : memref<32x128xbf16, #tpu.memory_space<vmem>>, vector<32x128xbf16>
    %cst = arith.constant dense<0.000000e+00> : vector<16x128xf32>
    %4 = tpu.matmul %2, %3, %cst {dimension_numbers = #tpu.dot_dimension_numbers<[1], [0], [0], [1], [0, 0, 1, 1], [], []>} : vector<16x32xbf16>, vector<32x128xbf16>, vector<16x128xf32> -> vector<16x128xf32>
    %5 = vector.extract_strided_slice %0 {offsets = [0, 0], sizes = [1, 128], strides = [1, 1]} : vector<4x128xf32> to vector<1x128xf32>
    %6 = vector.broadcast %5 : vector<1x128xf32> to vector<16x128xf32>
    %7 = arith.addf %4, %6 : vector<16x128xf32>
    %cst_5 = arith.constant 0.000000e+00 : f32
    %8 = vector.broadcast %cst_5 : f32 to vector<16x128xf32>
    %9 = arith.maximumf %7, %8 : vector<16x128xf32>
    %10 = arith.truncf %9 : vector<16x128xf32> to vector<16x128xbf16>
    %c0_6 = arith.constant 0 : index
    %c0_7 = arith.constant 0 : index
    %11 = vector.load %arg3[%c0_6, %c0_7] : memref<128x128xbf16, #tpu.memory_space<vmem>>, vector<128x128xbf16>
    %cst_8 = arith.constant dense<0.000000e+00> : vector<16x128xf32>
    %12 = tpu.matmul %10, %11, %cst_8 {dimension_numbers = #tpu.dot_dimension_numbers<[1], [0], [0], [1], [0, 0, 1, 1], [], []>} : vector<16x128xbf16>, vector<128x128xbf16>, vector<16x128xf32> -> vector<16x128xf32>
    %13 = vector.extract_strided_slice %0 {offsets = [1, 0], sizes = [1, 128], strides = [1, 1]} : vector<4x128xf32> to vector<1x128xf32>
    %14 = vector.broadcast %13 : vector<1x128xf32> to vector<16x128xf32>
    %15 = arith.addf %12, %14 : vector<16x128xf32>
    %cst_9 = arith.constant 0.000000e+00 : f32
    %16 = vector.broadcast %cst_9 : f32 to vector<16x128xf32>
    %17 = arith.maximumf %15, %16 : vector<16x128xf32>
    %18 = arith.truncf %17 : vector<16x128xf32> to vector<16x128xbf16>
    %c0_10 = arith.constant 0 : index
    %c0_11 = arith.constant 0 : index
    %19 = vector.load %arg4[%c0_10, %c0_11] : memref<128x128xbf16, #tpu.memory_space<vmem>>, vector<128x128xbf16>
    %cst_12 = arith.constant dense<0.000000e+00> : vector<16x128xf32>
    %20 = tpu.matmul %18, %19, %cst_12 {dimension_numbers = #tpu.dot_dimension_numbers<[1], [0], [0], [1], [0, 0, 1, 1], [], []>} : vector<16x128xbf16>, vector<128x128xbf16>, vector<16x128xf32> -> vector<16x128xf32>
    %21 = vector.extract_strided_slice %0 {offsets = [2, 0], sizes = [1, 128], strides = [1, 1]} : vector<4x128xf32> to vector<1x128xf32>
    %22 = vector.broadcast %21 : vector<1x128xf32> to vector<16x128xf32>
    %23 = arith.addf %20, %22 : vector<16x128xf32>
    %cst_13 = arith.constant 0.000000e+00 : f32
    %24 = vector.broadcast %cst_13 : f32 to vector<16x128xf32>
    %25 = arith.maximumf %23, %24 : vector<16x128xf32>
    %26 = arith.truncf %25 : vector<16x128xf32> to vector<16x128xbf16>
    %c0_14 = arith.constant 0 : index
    %c0_15 = arith.constant 0 : index
    %27 = vector.load %arg5[%c0_14, %c0_15] : memref<128x16xbf16, #tpu.memory_space<vmem>>, vector<128x16xbf16>
    %cst_16 = arith.constant dense<0.000000e+00> : vector<16x16xf32>
    %28 = tpu.matmul %26, %27, %cst_16 {dimension_numbers = #tpu.dot_dimension_numbers<[1], [0], [0], [1], [0, 0, 1, 1], [], []>} : vector<16x128xbf16>, vector<128x16xbf16>, vector<16x16xf32> -> vector<16x16xf32>
    %29 = vector.extract_strided_slice %0 {offsets = [3, 0], sizes = [1, 16], strides = [1, 1]} : vector<4x128xf32> to vector<1x16xf32>
    %30 = vector.broadcast %29 : vector<1x16xf32> to vector<16x16xf32>
    %31 = arith.addf %28, %30 : vector<16x16xf32>
    %32 = arith.truncf %31 : vector<16x16xf32> to vector<16x16xbf16>
    %c0_17 = arith.constant 0 : index
    %c0_18 = arith.constant 0 : index
    %33 = vector.load %arg7[%c0_17, %c0_18] : memref<16x16xbf16, #tpu.memory_space<vmem>>, vector<16x16xbf16>
    tpu.vector_store %arg7[%c0_17, %c0_18], %32 {strides = array<i32>} : memref<16x16xbf16, #tpu.memory_space<vmem>>, vector<16x16xbf16>,
    return
  }
  func.func @transform_0(%arg0: i32) -> (i32, i32) {
    %c0_i32 = arith.constant 0 : i32
    %c0_i32_0 = arith.constant 0 : i32
    return %arg0, %c0_i32 : i32, i32
  }
  func.func @transform_1(%arg0: i32) -> (i32, i32) {
    %c0_i32 = arith.constant 0 : i32
    %c0_i32_0 = arith.constant 0 : i32
    %c0_i32_1 = arith.constant 0 : i32
    return %c0_i32, %c0_i32_0 : i32, i32
  }
  func.func @transform_2(%arg0: i32) -> (i32, i32) {
    %c0_i32 = arith.constant 0 : i32
    %c0_i32_0 = arith.constant 0 : i32
    %c0_i32_1 = arith.constant 0 : i32
    return %c0_i32, %c0_i32_0 : i32, i32
  }
  func.func @transform_3(%arg0: i32) -> (i32, i32) {
    %c0_i32 = arith.constant 0 : i32
    %c0_i32_0 = arith.constant 0 : i32
    %c0_i32_1 = arith.constant 0 : i32
    return %c0_i32, %c0_i32_0 : i32, i32
  }
  func.func @transform_4(%arg0: i32) -> (i32, i32) {
    %c0_i32 = arith.constant 0 : i32
    %c0_i32_0 = arith.constant 0 : i32
    %c0_i32_1 = arith.constant 0 : i32
    return %c0_i32, %c0_i32_0 : i32, i32
  }
  func.func @transform_5(%arg0: i32) -> (i32, i32) {
    %c0_i32 = arith.constant 0 : i32
    %c0_i32_0 = arith.constant 0 : i32
    %c0_i32_1 = arith.constant 0 : i32
    return %c0_i32, %c0_i32_0 : i32, i32
  }
  func.func @transform_6(%arg0: i32) -> (i32, i32) {
    %c0_i32 = arith.constant 0 : i32
    %c0_i32_0 = arith.constant 0 : i32
    return %arg0, %c0_i32 : i32, i32
  }
}

</mosaic_0001>

<bundles_post_ra>
// kernel: mlp_forward.1
= control target key start
LH: loop header
LB: loop body
LE: loop exit
PB: predicated region body
PF: predicated region fallthrough
CT: control target
= control target key end

     0   :  { %11 = vsyncpa [#allocation3], 0  ;;  %s958_s0 = inlined_call_operand.hbm [shape: f32[16,32], index: 0, kind: input, shape index: {}]   ;;  %s959_s1 = inlined_call_operand.hbm [shape: bf16[32,128], index: 1, kind: input, shape index: {}]   ;;  %s960_s2 = inlined_call_operand.vmem [shape: bf16[128,128], index: 2, kind: input, shape index: {}]   ;;  %s961_s3 = inlined_call_operand.hbm [shape: bf16[128,128], index: 3, kind: input, shape index: {}]   ;;  %s962_s4 = inlined_call_operand.vmem [shape: bf16[128,16], index: 4, kind: input, shape index: {}]   ;;  %s963_s5 = inlined_call_operand.vmem [shape: f32[4,128], index: 5, kind: input, shape index: {}]   ;;  %s964_s6 = inlined_call_operand.hbm [shape: bf16[16,16], index: 6, kind: output, shape index: {}]  }
   0x1   :  { %12 = vsyncpa [#allocation6], 0 }
   0x2   :  { %13 = vsyncpa [#allocation4], 0  ;;  %s759_s21 = smov [#allocation5]   ;;  %s665_s25 = scalar_lea.hbm %s959_s1, 256 }
   0x3   :  { %s31_s22 = sshll.u32 %s759_s21, 4  ;;  %p666_p0 = scmp.ne.s32.totalorder %s959_s1, %s665_s25  ;;  %s32_s22 = int_to_ptr.vmem [resolvable:$true] %s31_s22 }
   0x4   :  { %p669_p1 = scmp.lt.u32.totalorder %s665_s25, %s959_s1 }
   0x6   :  { %p671_p2 = pnand %p669_p1, %p666_p0 }
   0x8   :  { %674 = shalt.err (!%p671_p2)
}
   0x9   :  { %s675_s30 = scalar_lea.vmem %s32_s22, 256  ;;  %p680_p4 = scmp.lt.s32.totalorder %s32_s22, %s32_s22 }
   0xa   :  { %p676_p3 = scmp.ne.s32.totalorder %s32_s22, %s675_s30  ;;  %p681_p5 = scmp.lt.s32.totalorder %s675_s30, %s675_s30 }
   0xc   :  { %p682_p6 = por %p681_p5, %p680_p4 }
   0xe   :  { %p683_p7 = pnand %p682_p6, %p676_p3 }
  0x10   :  { %686 = shalt.err (!%p683_p7)
}
  0x11   :  { %s760_s7 = smov 64   ;;  %s761_s8 = smov 4  }
  0x12   :  { %37 = dma.hbm_to_vmem [thread:$0]  %s959_s1, 256, %s32_s22, [#allocation6], %s760_s7, %s760_s7, %s761_s8  }
  0x13   :  { %s762_s11 = smov [#allocation2]   ;;  %s687_s15 = scalar_lea.hbm %s958_s0, 256 }
  0x14   :  { %s19_s12 = sshll.u32 %s762_s11, 4  ;;  %p688_p8 = scmp.ne.s32.totalorder %s958_s0, %s687_s15  ;;  %s20_s12 = int_to_ptr.vmem [resolvable:$true] %s19_s12 }
  0x15   :  { %p691_p9 = scmp.lt.u32.totalorder %s687_s15, %s958_s0 }
  0x17   :  { %p693_p10 = pnand %p691_p9, %p688_p8 }
  0x19   :  { %696 = shalt.err (!%p693_p10)
}
  0x1a   :  { %s697_s20 = scalar_lea.vmem %s20_s12, 256  ;;  %p702_p12 = scmp.lt.s32.totalorder %s20_s12, %s20_s12 }
  0x1b   :  { %p698_p11 = scmp.ne.s32.totalorder %s20_s12, %s697_s20  ;;  %p703_p13 = scmp.lt.s32.totalorder %s697_s20, %s697_s20 }
  0x1d   :  { %p704_p0 = por %p703_p13, %p702_p12 }
  0x1f   :  { %p705_p1 = pnand %p704_p0, %p698_p11 }
  0x21   :  { %708 = shalt.err (!%p705_p1)
}
  0x22   :  { %s763_s1 = smov 128   ;;  %s764_s21 = smov 8  }
  0x23   :  { %25 = dma.hbm_to_vmem [thread:$0]  %s958_s0, 256, %s20_s12, [#allocation3], %s763_s1, %s763_s1, %s764_s21  }
  0x24   :  { %s765_s24 = smov [#allocation7]   ;;  %s709_s28 = scalar_lea.hbm %s961_s3, 1024 }
  0x25   :  { %s45_s25 = sshll.u32 %s765_s24, 4  ;;  %p710_p2 = scmp.ne.s32.totalorder %s961_s3, %s709_s28  ;;  %s46_s25 = int_to_ptr.vmem [resolvable:$true] %s45_s25 }
  0x26   :  { %p713_p3 = scmp.lt.u32.totalorder %s709_s28, %s961_s3 }
  0x28   :  { %p715_p4 = pnand %p713_p3, %p710_p2 }
  0x2a   :  { %718 = shalt.err (!%p715_p4)
}
  0x2b   :  { %s719_s11 = scalar_lea.vmem %s46_s25, 1024  ;;  %p724_p6 = scmp.lt.s32.totalorder %s46_s25, %s46_s25 }
  0x2c   :  { %p720_p5 = scmp.ne.s32.totalorder %s46_s25, %s719_s11  ;;  %p725_p7 = scmp.lt.s32.totalorder %s719_s11, %s719_s11 }
  0x2e   :  { %p726_p8 = por %p725_p7, %p724_p6 }
  0x30   :  { %p727_p9 = pnand %p726_p8, %p720_p5 }
  0x32   :  { %730 = shalt.err (!%p727_p9)
}
  0x33   :  { %51 = dma.hbm_to_vmem [thread:$0]  %s961_s3, 1024, %s46_s25, [#allocation6], %s760_s7, %s760_s7, %s761_s8  }
  0x34   :  { %753 = dma.done.wait [#allocation3], 256  }
  0x35   :  { %754 = vsyncadd [#allocation3], 4294967040 }
  0x36   :  { %755 = dma.done.wait [#allocation6], 1280  }
  0x37   :  { %756 = vsyncadd [#allocation6], 4294966016  ;;  %v766_v0 = vmov 0.0   ;;  %vm767_vm0 = vmmov 0   ;;  %v639_v1 = vld [vmem:[#allocation5] sm:$0xff]   ;;  %v640_v2 = vld [vmem:[#allocation5 + $0x8] sm:$0xff]   ;;  %v74_v20 = vlaneseq }
  0x38   :  { %561 = vmatprep.subr.bf16.mxu0 %v766_v0  ;;  %565 = vmatprep.mubr.msk.bf16.mxu0 %vm767_vm0, %v766_v0  ;;  %v67_v3 = vld [vmem:[#allocation2] sm:$0xff]  ;;  %v68_v4 = vld [vmem:[#allocation2 + $0x8] sm:$0xff]  ;;  %vm90_vm1 = vcmask 261120   ;;  %v643_v8 = vld [vmem:[%s960_s2 + $0x10] sm:$0xff]   ;;  %vm479_vm2 = vcmask 125952  }
  0x39   :  { %569 = vmatprep.subr.bf16.mxu1 %v766_v0  ;;  %585 = vmatprep.mubr.msk.bf16.mxu1 %vm767_vm0, %v766_v0  ;;  %v641_v5 = vld [vmem:[%s960_s2] sm:$0xff]   ;;  %v69_v6 = vpack.c.bf16 %v68_v4, %v67_v3  ;;  %v642_v7 = vld [vmem:[%s960_s2 + $0x8] sm:$0xff]   ;;  %v644_v9 = vld [vmem:[%s960_s2 + $0x18] sm:$0xff]   ;;  %v894_v21 = vshrl.u32 %v74_v20, 7 }
  0x3a   :  { %562 = vmatpush3.bf16.msra.mxu0 %v639_v1  ;;  %570 = vmatpush3.bf16.msra.mxu1 %v641_v5  ;;  %v645_v10 = vld [vmem:[%s960_s2 + $0x20] sm:$0xff]   ;;  %v646_v11 = vld [vmem:[%s960_s2 + $0x28] sm:$0xff]   ;;  %v647_v12 = vld [vmem:[%s960_s2 + $0x30] sm:$0xff]  }
  0x3b   :  { %563 = vmatprep.subr.bf16.mxu0 %v766_v0  ;;  %571 = vmatprep.subr.bf16.mxu1 %v766_v0  ;;  %v648_v13 = vld [vmem:[%s960_s2 + $0x38] sm:$0xff]   ;;  %v649_v14 = vld [vmem:[#allocation7] sm:$0xff]   ;;  %v650_v15 = vld [vmem:[#allocation7 + $0x8] sm:$0xff]   ;;  %v76_v22 = vsub.s32 0, %v894_v21  ;;  %v156_v42 = vsub.s32 1, %v894_v21  ;;  %v268_v55 = vsub.s32 2, %v894_v21 }
  0x3c   :  { %v651_v16 = vld [vmem:[#allocation7 + $0x10] sm:$0xff]   ;;  %v652_v17 = vld [vmem:[#allocation7 + $0x18] sm:$0xff]   ;;  %v653_v18 = vld [vmem:[#allocation7 + $0x20] sm:$0xff]  }
  0x3d   :  { %v654_v19 = vld [vmem:[#allocation7 + $0x28] sm:$0xff]   ;;  %v900_v23 = vld [vmem:[%s963_s5] sm:$0xf]  ;;  %v655_v34 = vld [vmem:[#allocation7 + $0x30] sm:$0xff]  }
  0x3e   :  { %564 = vmatpush3.bf16.msra.mxu0 %v640_v2  ;;  %572 = vmatpush3.bf16.msra.mxu1 %v642_v7  ;;  %v77_v24 = vrot.slane %v900_v23, %v76_v22  ;;  %v656_v35 = vld [vmem:[#allocation7 + $0x38] sm:$0xff]   ;;  %v657_v36 = vld [vmem:[%s962_s4] sm:$0xff]   ;;  %v658_v37 = vld [vmem:[%s962_s4 + $0x8] sm:$0xff]   ;;  %v157_v43 = vrot.slane %v900_v23, %v156_v42  ;;  %v269_v56 = vrot.slane %v900_v23, %v268_v55 }
  0x3f   :  { %589 = vmatprep.subr.bf16.mxu0 %v766_v0  ;;  %573 = vmatprep.subr.bf16.mxu1 %v766_v0  ;;  %v659_v38 = vld [vmem:[%s962_s4 + $0x10] sm:$0xff]   ;;  %v660_v39 = vld [vmem:[%s962_s4 + $0x18] sm:$0xff]   ;;  %v661_v40 = vld [vmem:[%s962_s4 + $0x20] sm:$0xff]  }
  0x40   :  { %v662_v41 = vld [vmem:[%s962_s4 + $0x28] sm:$0xff]   ;;  %v663_v53 = vld [vmem:[%s962_s4 + $0x30] sm:$0xff]   ;;  %v664_v54 = vld [vmem:[%s962_s4 + $0x38] sm:$0xff]   ;;  %s768_s4 = smov [#allocation8]  }
  0x41   :  { %566 = vmatmul.mubr.msk.bf16.vlgmr.msra.gmra.mrb[0].mxu0 %vm90_vm1, %v69_v6  ;;  %s487_s19 = sshll.u32 %s768_s4, 4  ;;  %s488_s19 = int_to_ptr.vmem [resolvable:$true] %s487_s19 }
  0x42   :  { %605 = vmatprep.mubr.msk.bf16.mxu0 %vm767_vm0, %v766_v0  ;;  %574 = vmatpush3.bf16.msra.mxu1 %v643_v8  ;;  %s731_s20 = scalar_lea.vmem %s488_s19, 128  ;;  %p736_p11 = scmp.lt.s32.totalorder %s488_s19, %s488_s19 }
  0x43   :  { %575 = vmatprep.subr.bf16.mxu1 %v766_v0  ;;  %590 = vmatpush3.bf16.msra.mxu0 %v649_v14  ;;  %p732_p10 = scmp.ne.s32.totalorder %s488_s19, %s731_s20  ;;  %p737_p12 = scmp.lt.s32.totalorder %s731_s20, %s731_s20 }
  0x44   :  { %591 = vmatprep.subr.bf16.mxu0 %v766_v0 }
  0x45   :  { %p738_p13 = por %p737_p12, %p736_p11 }
  0x46   :  { %576 = vmatpush3.bf16.msra.mxu1 %v644_v9 }
  0x47   :  { %577 = vmatprep.subr.bf16.mxu1 %v766_v0  ;;  %592 = vmatpush3.bf16.msra.mxu0 %v650_v15  ;;  %p739_p0 = pnand %p738_p13, %p732_p10 }
  0x48   :  { %593 = vmatprep.subr.bf16.mxu0 %v766_v0 }
  0x4a   :  { %578 = vmatpush3.bf16.msra.mxu1 %v645_v10 }
  0x4b   :  { %579 = vmatprep.subr.bf16.mxu1 %v766_v0  ;;  %594 = vmatpush3.bf16.msra.mxu0 %v651_v16 }
  0x4c   :  { %595 = vmatprep.subr.bf16.mxu0 %v766_v0 }
  0x4e   :  { %580 = vmatpush3.bf16.msra.mxu1 %v646_v11 }
  0x4f   :  { %581 = vmatprep.subr.bf16.mxu1 %v766_v0  ;;  %596 = vmatpush3.bf16.msra.mxu0 %v652_v17 }
  0x50   :  { %597 = vmatprep.subr.bf16.mxu0 %v766_v0 }
  0x52   :  { %582 = vmatpush3.bf16.msra.mxu1 %v647_v12 }
  0x53   :  { %583 = vmatprep.subr.bf16.mxu1 %v766_v0  ;;  %598 = vmatpush3.bf16.msra.mxu0 %v653_v18 }
  0x54   :  { %599 = vmatprep.subr.bf16.mxu0 %v766_v0 }
  0x56   :  { %584 = vmatpush3.bf16.msra.mxu1 %v648_v13 }
  0x57   :  { %609 = vmatprep.subr.bf16.mxu1 %v766_v0  ;;  %600 = vmatpush3.bf16.msra.mxu0 %v654_v19 }
  0x58   :  { %601 = vmatprep.subr.bf16.mxu0 %v766_v0 }
  0x5b   :  { %602 = vmatpush3.bf16.msra.mxu0 %v655_v34 }
  0x5c   :  { %603 = vmatprep.subr.bf16.mxu0 %v766_v0 }
  0x5f   :  { %604 = vmatpush3.bf16.msra.mxu0 %v656_v35 }
 0x114   :  { %v128_v25 = vpop.f32.mrb[0].mxu0 }
 0x115   :  { %v129_v26 = vadd.f32 %v128_v25, %v77_v24  ;;  %v567_v27 = vpop.f32.mrb[1].mxu0 }
 0x116   :  { %v131_v28 = vpop.f32.mrb[2].mxu0 }
 0x117   :  { %v132_v29 = vadd.f32 %v131_v28, %v77_v24  ;;  %v568_v30 = vpop.f32.mrb[3].mxu0  ;;  %v135_v31 = vmax.f32 %v129_v26, 0.0 }
 0x119   :  { %v136_v32 = vmax.f32 %v132_v29, 0.0 }
 0x11b   :  { %v137_v33 = vpack.c.bf16 %v136_v32, %v135_v31 }
 0x11d   :  { %586 = vmatmul.mubr.bf16.vlgmr.msra.gmra.mrb[0].mxu1 %v137_v33 }
 0x11e   :  { %625 = vmatprep.mubr.msk.bf16.mxu1 %vm767_vm0, %v766_v0  ;;  %610 = vmatpush3.bf16.msra.mxu1 %v657_v36 }
 0x11f   :  { %611 = vmatprep.subr.bf16.mxu1 %v766_v0 }
 0x122   :  { %612 = vmatpush3.bf16.msra.mxu1 %v658_v37 }
 0x123   :  { %613 = vmatprep.subr.bf16.mxu1 %v766_v0 }
 0x126   :  { %614 = vmatpush3.bf16.msra.mxu1 %v659_v38 }
 0x127   :  { %615 = vmatprep.subr.bf16.mxu1 %v766_v0 }
 0x12a   :  { %616 = vmatpush3.bf16.msra.mxu1 %v660_v39 }
 0x12b   :  { %617 = vmatprep.subr.bf16.mxu1 %v766_v0 }
 0x12e   :  { %618 = vmatpush3.bf16.msra.mxu1 %v661_v40 }
 0x12f   :  { %619 = vmatprep.subr.bf16.mxu1 %v766_v0 }
 0x132   :  { %620 = vmatpush3.bf16.msra.mxu1 %v662_v41 }
 0x133   :  { %621 = vmatprep.subr.bf16.mxu1 %v766_v0 }
 0x136   :  { %622 = vmatpush3.bf16.msra.mxu1 %v663_v53 }
 0x137   :  { %623 = vmatprep.subr.bf16.mxu1 %v766_v0  ;;  %v380_v0 = vsub.s32 3, %v894_v21 }
 0x139   :  { %v381_v3 = vrot.slane %v900_v23, %v380_v0 }
 0x13a   :  { %624 = vmatpush3.bf16.msra.mxu1 %v664_v54 }
 0x1f0   :  { %v240_v44 = vpop.f32.mrb[0].mxu1 }
 0x1f1   :  { %v241_v45 = vadd.f32 %v240_v44, %v157_v43  ;;  %v587_v46 = vpop.f32.mrb[1].mxu1 }
 0x1f2   :  { %v243_v47 = vpop.f32.mrb[2].mxu1 }
 0x1f3   :  { %v244_v48 = vadd.f32 %v243_v47, %v157_v43  ;;  %v588_v49 = vpop.f32.mrb[3].mxu1  ;;  %v247_v50 = vmax.f32 %v241_v45, 0.0 }
 0x1f5   :  { %v248_v51 = vmax.f32 %v244_v48, 0.0 }
 0x1f7   :  { %v249_v52 = vpack.c.bf16 %v248_v51, %v247_v50 }
 0x1f9   :  { %606 = vmatmul.mubr.bf16.vlgmr.msra.gmra.mrb[4].mxu0 %v249_v52 }
 0x2cc   :  { %v352_v57 = vpop.f32.mrb[4].mxu0 }
 0x2cd   :  { %v353_v58 = vadd.f32 %v352_v57, %v269_v56  ;;  %v607_v59 = vpop.f32.mrb[5].mxu0 }
 0x2ce   :  { %v355_v60 = vpop.f32.mrb[6].mxu0 }
 0x2cf   :  { %v356_v61 = vadd.f32 %v355_v60, %v269_v56  ;;  %v608_v62 = vpop.f32.mrb[7].mxu0  ;;  %v359_v63 = vmax.f32 %v353_v58, 0.0 }
 0x2d1   :  { %v360_v1 = vmax.f32 %v356_v61, 0.0 }
 0x2d3   :  { %v361_v2 = vpack.c.bf16 %v360_v1, %v359_v63 }
 0x2d5   :  { %626 = vmatmul.mubr.bf16.vlgmr.msra.gmra.mrb[4].mxu1 %v361_v2 }
 0x3a8   :  { %v464_v4 = vpop.f32.mrb[4].mxu1 }
 0x3a9   :  { %v465_v5 = vadd.f32 %v464_v4, %v381_v3  ;;  %v627_v6 = vpop.f32.mrb[5].mxu1 }
 0x3aa   :  { %v467_v7 = vpop.f32.mrb[6].mxu1 }
 0x3ab   :  { %v529_v8 = vpack.c.bf16 %v465_v5, %v465_v5  ;;  %v468_v9 = vadd.f32 %v467_v7, %v381_v3  ;;  %v628_v10 = vpop.f32.mrb[7].mxu1 }
 0x3ad   :  { %v530_v11 = vpack.c.bf16 %v468_v9, %v468_v9  ;;  %480 = vst.msk [vmem:[#allocation8] sm:$0xf] %vm479_vm2, %v529_v8 }
 0x3af   :  { %481 = vst.msk [vmem:[#allocation8 + $0x4] sm:$0xf] %vm479_vm2, %v530_v11 }
 0x3b0   :  { %742 = shalt.err (!%p739_p0)
}
 0x3b1   :  { %s743_s22 = scalar_lea.hbm %s964_s6, 128 }
 0x3b2   :  { %p744_p1 = scmp.ne.s32.totalorder %s964_s6, %s743_s22  ;;  %p747_p2 = scmp.lt.u32.totalorder %s743_s22, %s964_s6 }
 0x3b4   :  { %p749_p3 = pnand %p747_p2, %p744_p1 }
 0x3b6   :  { %752 = shalt.err (!%p749_p3)
}
 0x3b7   :  { %493 = dma.vmem_to_hbm [thread:$0]  %s488_s19, 128, %s964_s6, [#allocation4], %s760_s7, %s760_s7, %s761_s8  }
 0x3b8   :  { %757 = dma.done.wait [#allocation4], 128  }
 0x3b9   :  { %758 = vsyncadd [#allocation4], 4294967168 }
 0x3ba   :  { %497 = vsyncpa [#allocation3], 1 }
 0x3bb   :  { %498 = vsyncpa [#allocation6], 1 }
 0x3bc   :  { %499 = vsyncpa [#allocation4], 1 }

</bundles_post_ra>
